<compile_context>
chip_gen: v7x
topology: tpu7x:2x2x1
jax: 0.10.0
libtpu: 0.0.40
codegen_flags: <defaults>
</compile_context>

<pallas_src>
import jax
import jax.numpy as jnp
from jax import lax
from jax.experimental import pallas as pl
from jax.experimental.pallas import tpu as pltpu
import numpy as np


def _wavepool_kernel(x_ref, ll_ref, lh_ref, hl_ref, hh_ref):
    # x_ref block: (4, tm, LANE); planes are the 2x2 window positions
    #   a = x[2i, 2j], b = x[2i, 2j+1], c = x[2i+1, 2j], d = x[2i+1, 2j+1].
    a = x_ref[0]
    b = x_ref[1]
    c = x_ref[2]
    d = x_ref[3]
    half = jnp.asarray(0.5, dtype=a.dtype)
    # PyTorch Conv2d = cross-correlation with L=[1,1]/sqrt(2), H=[-1,1]/sqrt(2):
    ll_ref[...] = half * (a + b + c + d)      # outer(L, L)
    lh_ref[...] = half * (b - a + d - c)      # outer(L, H)
    hl_ref[...] = half * (c + d - a - b)      # outer(H, L)
    hh_ref[...] = half * (a - b - c + d)      # outer(H, H)


def _pick_flat(total):
    """Largest lane width in {1024,512,256,128} dividing `total`, else None."""
    for lane in (1024, 512, 256, 128):
        if total % lane == 0:
            return total // lane, lane
    return None


def _pick_tm(m, tm_target=256):
    """Row-tile size: big tiles (amortize per-step overhead) but >= ~4 grid
    steps so both v7x TensorCores get work; multiple of 8 sublanes."""
    tm = min(tm_target, m)
    if m >= 32:
        tm = min(tm, pl.cdiv(m, 4))
    if m >= 8:
        tm = max(8, (tm // 8) * 8)
    else:
        tm = m
    return tm


def wave_pool2(x, *, tm=256):
    """Haar wavelet pooling.  x: (N, C, H, W) float32.
    Returns (LL, LH, HL, HH), each (N, C, H//2, W//2)."""
    N, C, H, W = x.shape
    Ho, Wo = H // 2, W // 2
    if H != 2 * Ho or W != 2 * Wo:
        # Odd trailing row/col is dropped (matches stride-2, kernel-2 conv).
        x = x[:, :, : 2 * Ho, : 2 * Wo]
    R = N * C * Ho
    T = R * Wo

    # ---- input layout glue (one free reshape + one transpose) -------------
    flat = _pick_flat(T)
    if flat is not None:
        M, LANE = flat          # lane-dense flattened 2-D tiling
    else:
        M, LANE = R, Wo         # natural-shape fallback (last dim = full dim)
    planes = x.reshape(R, 2, Wo, 2).transpose(1, 3, 0, 2).reshape(4, M, LANE)

    # ---- kernel ------------------------------------------------------------
    blk_tm = _pick_tm(M, tm)
    grid = (pl.cdiv(M, blk_tm),)
    out_block = pl.BlockSpec((blk_tm, LANE), lambda i: (i, 0))
    ll, lh, hl, hh = pl.pallas_call(
        _wavepool_kernel,
        grid=grid,
        in_specs=[pl.BlockSpec((4, blk_tm, LANE), lambda i: (0, i, 0))],
        out_specs=(out_block, out_block, out_block, out_block),
        out_shape=tuple(jax.ShapeDtypeStruct((M, LANE), x.dtype)
                        for _ in range(4)),
        compiler_params=pltpu.CompilerParams(
            dimension_semantics=("parallel",),   # shard grid over v7x's 2 TCs
            allow_input_fusion=[True],           # let XLA fuse the transpose
            vmem_limit_bytes=32 * 1024 * 1024,   # 16 MiB buffers + headroom
        ),
    )(planes)

    # Free reshapes only (no slicing / splitting) back to NCHW subbands.
    shape = (N, C, Ho, Wo)
    return (ll.reshape(shape), lh.reshape(shape),
            hl.reshape(shape), hh.reshape(shape))


# ---------------------------- reference & tests ------------------------------

def _haar_filters(in_channels, dtype=jnp.float32):
    """Deterministic parameter setup identical to get_wav_two (pool=True)."""
    L = (1.0 / np.sqrt(2.0)) * np.ones((1, 2))
    Hf = (1.0 / np.sqrt(2.0)) * np.ones((1, 2))
    Hf[0, 0] = -Hf[0, 0]
    LL = np.transpose(L) * L
    LH = np.transpose(L) * Hf
    HL = np.transpose(Hf) * L
    HH = np.transpose(Hf) * Hf

    def expand(f):  # (C, 1, 2, 2) depthwise weights, OIHW
        return jnp.asarray(np.broadcast_to(f[None, None], (in_channels, 1, 2, 2)),
                           dtype=dtype)

    return expand(LL), expand(LH), expand(HL), expand(HH)


def _reference(x):
    """Pure-JAX reference: grouped (depthwise) conv, kernel 2, stride 2."""
    N, C, H, W = x.shape
    wLL, wLH, wHL, wHH = _haar_filters(C, x.dtype)
    conv = lambda w: lax.conv_general_dilated(
        x, w, window_strides=(2, 2), padding="VALID",
        dimension_numbers=("NCHW", "OIHW", "NCHW"),
        feature_group_count=C, precision=lax.Precision.HIGHEST)
    return conv(wLL), conv(wLH), conv(wHL), conv(wHH)


def _check(x):
    outs = jax.block_until_ready(jax.jit(wave_pool2)(x))
    refs = _reference(x)
    N, C, H, W = x.shape
    for o, r, name in zip(outs, refs, ("LL", "LH", "HL", "HH")):
        assert o.shape == (N, C, H // 2, W // 2), (name, o.shape)
        np.testing.assert_allclose(np.asarray(o), np.asarray(r),
                                   rtol=1e-5, atol=1e-5, err_msg=name)


if __name__ == "__main__":
    root = jax.random.PRNGKey(0)
    k0, k1, k2, k3, k4 = jax.random.split(root, 5)

    # Primary small example consistent with the module.
    _check(jax.random.normal(k0, (2, 4, 16, 16), dtype=jnp.float32))

    # Multi-step grid, LANE=128, T % 1024 != 0, partial last block, megacore.
    _check(jax.random.normal(k1, (2, 3, 112, 112), dtype=jnp.float32))

    # Larger case from the review: LANE=1024, multi-step grid.
    _check(jax.random.normal(k2, (8, 96, 56, 56), dtype=jnp.float32))

    # T not a multiple of 128 -> natural-shape fallback path.
    _check(jax.random.normal(k3, (1, 3, 10, 14), dtype=jnp.float32))

    # Odd spatial dims -> trailing row/col dropped (matches the conv).
    _check(jax.random.normal(k4, (1, 2, 9, 9), dtype=jnp.float32))

    print("KERNEL_OK")
</pallas_src>

<mosaic_0001>
module attributes {stable_mosaic.version = 11 : i64} {
  func.func @_wavepool_kernel(%arg0: i32, %arg1: memref<4x1x512xf32, #tpu.memory_space<vmem>>, %arg2: memref<1x512xf32, #tpu.memory_space<vmem>>, %arg3: memref<1x512xf32, #tpu.memory_space<vmem>>, %arg4: memref<1x512xf32, #tpu.memory_space<vmem>>, %arg5: memref<1x512xf32, #tpu.memory_space<vmem>>) attributes {dimension_semantics = [#tpu.dimension_semantics<parallel>], iteration_bounds = array<i64: 1>, scalar_prefetch = 0 : i64, scratch_operands = 0 : i64, tpu.core_type = #tpu.core_type<tc>, window_params = [{transform_indices = @transform_0, window_bounds = array<i64: 4, 1, 512>}, {transform_indices = @transform_1, window_bounds = array<i64: 1, 512>}, {transform_indices = @transform_2, window_bounds = array<i64: 1, 512>}, {transform_indices = @transform_3, window_bounds = array<i64: 1, 512>}, {transform_indices = @transform_4, window_bounds = array<i64: 1, 512>}]} {
    %c0 = arith.constant 0 : index
    %c0_0 = arith.constant 0 : index
    %c0_1 = arith.constant 0 : index
    %0 = vector.load %arg1[%c0, %c0_0, %c0_1] : memref<4x1x512xf32, #tpu.memory_space<vmem>>, vector<1x1x512xf32>
    %1 = vector.shape_cast %0 : vector<1x1x512xf32> to vector<1x512xf32>
    %c1 = arith.constant 1 : index
    %c0_2 = arith.constant 0 : index
    %c0_3 = arith.constant 0 : index
    %2 = vector.load %arg1[%c1, %c0_2, %c0_3] : memref<4x1x512xf32, #tpu.memory_space<vmem>>, vector<1x1x512xf32>
    %3 = vector.shape_cast %2 : vector<1x1x512xf32> to vector<1x512xf32>
    %c2 = arith.constant 2 : index
    %c0_4 = arith.constant 0 : index
    %c0_5 = arith.constant 0 : index
    %4 = vector.load %arg1[%c2, %c0_4, %c0_5] : memref<4x1x512xf32, #tpu.memory_space<vmem>>, vector<1x1x512xf32>
    %5 = vector.shape_cast %4 : vector<1x1x512xf32> to vector<1x512xf32>
    %c3 = arith.constant 3 : index
    %c0_6 = arith.constant 0 : index
    %c0_7 = arith.constant 0 : index
    %6 = vector.load %arg1[%c3, %c0_6, %c0_7] : memref<4x1x512xf32, #tpu.memory_space<vmem>>, vector<1x1x512xf32>
    %7 = vector.shape_cast %6 : vector<1x1x512xf32> to vector<1x512xf32>
    %8 = arith.addf %1, %3 : vector<1x512xf32>
    %9 = arith.addf %8, %5 : vector<1x512xf32>
    %10 = arith.addf %9, %7 : vector<1x512xf32>
    %cst = arith.constant 5.000000e-01 : f32
    %11 = vector.broadcast %cst : f32 to vector<1x512xf32>
    %12 = arith.mulf %11, %10 : vector<1x512xf32>
    %c0_8 = arith.constant 0 : index
    %c0_9 = arith.constant 0 : index
    %13 = vector.load %arg2[%c0_8, %c0_9] : memref<1x512xf32, #tpu.memory_space<vmem>>, vector<1x512xf32>
    tpu.vector_store %arg2[%c0_8, %c0_9], %12 {strides = array<i32>} : memref<1x512xf32, #tpu.memory_space<vmem>>, vector<1x512xf32>,
    %14 = arith.subf %3, %1 : vector<1x512xf32>
    %15 = arith.addf %14, %7 : vector<1x512xf32>
    %16 = arith.subf %15, %5 : vector<1x512xf32>
    %cst_10 = arith.constant 5.000000e-01 : f32
    %17 = vector.broadcast %cst_10 : f32 to vector<1x512xf32>
    %18 = arith.mulf %17, %16 : vector<1x512xf32>
    %c0_11 = arith.constant 0 : index
    %c0_12 = arith.constant 0 : index
    %19 = vector.load %arg3[%c0_11, %c0_12] : memref<1x512xf32, #tpu.memory_space<vmem>>, vector<1x512xf32>
    tpu.vector_store %arg3[%c0_11, %c0_12], %18 {strides = array<i32>} : memref<1x512xf32, #tpu.memory_space<vmem>>, vector<1x512xf32>,
    %20 = arith.addf %5, %7 : vector<1x512xf32>
    %21 = arith.subf %20, %1 : vector<1x512xf32>
    %22 = arith.subf %21, %3 : vector<1x512xf32>
    %cst_13 = arith.constant 5.000000e-01 : f32
    %23 = vector.broadcast %cst_13 : f32 to vector<1x512xf32>
    %24 = arith.mulf %23, %22 : vector<1x512xf32>
    %c0_14 = arith.constant 0 : index
    %c0_15 = arith.constant 0 : index
    %25 = vector.load %arg4[%c0_14, %c0_15] : memref<1x512xf32, #tpu.memory_space<vmem>>, vector<1x512xf32>
    tpu.vector_store %arg4[%c0_14, %c0_15], %24 {strides = array<i32>} : memref<1x512xf32, #tpu.memory_space<vmem>>, vector<1x512xf32>,
    %26 = arith.subf %1, %3 : vector<1x512xf32>
    %27 = arith.subf %26, %5 : vector<1x512xf32>
    %28 = arith.addf %27, %7 : vector<1x512xf32>
    %cst_16 = arith.constant 5.000000e-01 : f32
    %29 = vector.broadcast %cst_16 : f32 to vector<1x512xf32>
    %30 = arith.mulf %29, %28 : vector<1x512xf32>
    %c0_17 = arith.constant 0 : index
    %c0_18 = arith.constant 0 : index
    %31 = vector.load %arg5[%c0_17, %c0_18] : memref<1x512xf32, #tpu.memory_space<vmem>>, vector<1x512xf32>
    tpu.vector_store %arg5[%c0_17, %c0_18], %30 {strides = array<i32>} : memref<1x512xf32, #tpu.memory_space<vmem>>, vector<1x512xf32>,
    return
  }
  func.func @transform_0(%arg0: i32) -> (i32, i32, i32) {
    %c0_i32 = arith.constant 0 : i32
    %c0_i32_0 = arith.constant 0 : i32
    %c0_i32_1 = arith.constant 0 : i32
    return %c0_i32, %arg0, %c0_i32_0 : i32, i32, i32
  }
  func.func @transform_1(%arg0: i32) -> (i32, i32) {
    %c0_i32 = arith.constant 0 : i32
    %c0_i32_0 = arith.constant 0 : i32
    return %arg0, %c0_i32 : i32, i32
  }
  func.func @transform_2(%arg0: i32) -> (i32, i32) {
    %c0_i32 = arith.constant 0 : i32
    %c0_i32_0 = arith.constant 0 : i32
    return %arg0, %c0_i32 : i32, i32
  }
  func.func @transform_3(%arg0: i32) -> (i32, i32) {
    %c0_i32 = arith.constant 0 : i32
    %c0_i32_0 = arith.constant 0 : i32
    return %arg0, %c0_i32 : i32, i32
  }
  func.func @transform_4(%arg0: i32) -> (i32, i32) {
    %c0_i32 = arith.constant 0 : i32
    %c0_i32_0 = arith.constant 0 : i32
    return %arg0, %c0_i32 : i32, i32
  }
}

</mosaic_0001>

<bundles_post_ra>
// kernel: wave_pool2.1
= control target key start
LH: loop header
LB: loop body
LE: loop exit
PB: predicated region body
PF: predicated region fallthrough
CT: control target
= control target key end

     0   :  { %v23_v7 = vlaneseq  ;;  %s111_s0 = inlined_call_operand.vmem [shape: f32[4,1,512], index: 0, kind: input, shape index: {}]   ;;  %s112_s1 = inlined_call_operand.vmem [shape: f32[1,512], index: 1, kind: output, shape index: {0}]   ;;  %s113_s2 = inlined_call_operand.vmem [shape: f32[1,512], index: 2, kind: output, shape index: {1}]   ;;  %s114_s4 = inlined_call_operand.vmem [shape: f32[1,512], index: 4, kind: output, shape index: {3}]   ;;  %s115_s3 = inlined_call_operand.vmem [shape: f32[1,512], index: 3, kind: output, shape index: {2}]  }
   0x1   :  { %v12_v0 = vld [vmem:[%s111_s0] sm:$0xf]  ;;  %v59_v1 = vld [vmem:[%s111_s0 + $0x4] sm:$0xf]  ;;  %v60_v2 = vld [vmem:[%s111_s0 + $0x8] sm:$0xf] }
   0x2   :  { %v61_v3 = vld [vmem:[%s111_s0 + $0xc] sm:$0xf]  ;;  %v19_v4 = vadd.f32 %v59_v1, %v12_v0  ;;  %v28_v5 = vsub.f32 %v59_v1, %v12_v0  ;;  %v38_v6 = vsub.f32 %v12_v0, %v59_v1  ;;  %vm25_vm0 = vcmp.lt.s32.totalorder %v23_v7, 512 }
   0x3   :  { %v33_v8 = vadd.f32 %v61_v3, %v60_v2 }
   0x4   :  { %v20_v9 = vadd.f32 %v60_v2, %v19_v4  ;;  %v29_v10 = vadd.f32 %v61_v3, %v28_v5  ;;  %v39_v11 = vsub.f32 %v38_v6, %v60_v2 }
   0x5   :  { %v34_v12 = vsub.f32 %v33_v8, %v12_v0 }
   0x6   :  { %v21_v13 = vadd.f32 %v61_v3, %v20_v9  ;;  %v30_v14 = vsub.f32 %v29_v10, %v60_v2  ;;  %v40_v15 = vadd.f32 %v61_v3, %v39_v11 }
   0x7   :  { %v35_v16 = vsub.f32 %v34_v12, %v59_v1 }
   0x8   :  { %v22_v17 = vmul.f32 0.5, %v21_v13  ;;  %v31_v18 = vmul.f32 0.5, %v30_v14  ;;  %v41_v19 = vmul.f32 0.5, %v40_v15 }
   0x9   :  { %v36_v20 = vmul.f32 0.5, %v35_v16 }
   0xa   :  { %27 = vst.msk [vmem:[%s112_s1] sm:$0xf] %vm25_vm0, %v22_v17  ;;  %32 = vst.msk [vmem:[%s113_s2] sm:$0xf] %vm25_vm0, %v31_v18 }
   0xb   :  { %42 = vst.msk [vmem:[%s114_s4] sm:$0xf] %vm25_vm0, %v41_v19  ;;  %37 = vst.msk [vmem:[%s115_s3] sm:$0xf] %vm25_vm0, %v36_v20 }

</bundles_post_ra>
